<compile_context>
chip_gen: v6e
topology: v6e:2x2x1
jax: 0.10.0
libtpu: 0.0.40
codegen_flags: <defaults>
</compile_context>

<pallas_src>
import math

import jax
import jax.numpy as jnp
from jax.experimental import pallas as pl
from jax.experimental.pallas import tpu as pltpu


def _round_up(x: int, m: int) -> int:
    return ((x + m - 1) // m) * m


def _device_config():
    """(num_tensorcores, per_input_buffer_budget_bytes, vmem_limit_bytes)."""
    try:
        kind = jax.devices()[0].device_kind.lower()
    except Exception:  # pragma: no cover - defensive
        kind = ""
    if "v7" in kind:
        # 2 TCs / chip, only 64 MiB VMEM per TC: keep total well under budget.
        return 2, 8 * 1024 * 1024, 40 * 1024 * 1024
    if "v5" in kind or "v6" in kind:
        # Single TC, 128 MiB VMEM: bigger tiles amortize per-step overhead.
        return 1, 12 * 1024 * 1024, 64 * 1024 * 1024
    # Unknown part: conservative defaults.
    return 1, 8 * 1024 * 1024, 32 * 1024 * 1024


def _make_colsum_kernel(n_rows, tile_rows, acc_rows, blocks_per_part, needs_mask):
    """Column sums of a (n_rows, d_eff) array, grid = (parts, d_blocks, row_blocks)."""
    n_chunks = tile_rows // acc_rows

    def kernel(v_ref, o_ref, acc_ref):
        p = pl.program_id(0)          # row partition (parallel)
        i = pl.program_id(2)          # row-block within partition (reduction)

        @pl.when(i == 0)
        def _():
            acc_ref[...] = jnp.zeros_like(acc_ref)

        def accumulate(v):
            # VPU-only: fold groups of `acc_rows` sublanes with elementwise adds.
            v3 = v.reshape(n_chunks, acc_rows, v.shape[-1])
            acc_ref[...] += jnp.sum(v3, axis=0)

        if needs_mask:
            gblock = p * blocks_per_part + i
            row_start = gblock * tile_rows
            is_full = row_start + tile_rows <= n_rows

            # Fast path: full, in-bounds tile -> just cast + add.
            @pl.when(is_full)
            def _():
                accumulate(v_ref[...].astype(jnp.float32))

            # Slow path (tail / duplicated block only): zero rows >= n_rows.
            @pl.when(jnp.logical_not(is_full))
            def _():
                v = v_ref[...].astype(jnp.float32)
                rows = row_start + jax.lax.broadcasted_iota(jnp.int32, v.shape, 0)
                accumulate(jnp.where(rows < n_rows, v, jnp.float32(0.0)))
        else:
            accumulate(v_ref[...].astype(jnp.float32))

        @pl.when(i == pl.num_programs(2) - 1)
        def _():
            # The only cross-sublane (XLU) reduce, once per output block.
            o_ref[...] = jnp.sum(acc_ref[...], axis=0, keepdims=True).reshape(
                o_ref.shape
            )

    return kernel


def avg_attention(query, key, value):
    """JAX/Pallas equivalent of AvgAttention.forward(query, key, value)."""
    del query, key  # unused, same as the reference module

    d = value.shape[-1]
    v_full = value.reshape(-1, d)
    n_orig = v_full.shape[0]

    num_tc, per_buffer, vmem_limit = _device_config()

    # Lane-dense fold for narrow D: fold lcm(d,128)//d consecutive rows into the
    # 128-lane axis; any ragged fold tail is summed in the wrapper.
    fold = 1
    if d < 128:
        f = math.lcm(d, 128) // d
        if n_orig >= f:
            fold = f
    n_main = (n_orig // fold) * fold
    if fold > 1:
        head = v_full if n_main == n_orig else v_full[:n_main]
        v2d = head.reshape(n_main // fold, fold * d)
        tail = None if n_main == n_orig else v_full[n_main:]
    else:
        v2d = v_full
        tail = None

    n_rows, d_eff = v2d.shape
    itemsize = jnp.dtype(value.dtype).itemsize

    # Feature-axis split only on multi-TC parts (v7x); single-TC chips keep one
    # linear HBM stream (no extra grid steps, no strided reads).
    if num_tc >= 2 and d_eff >= 1024 and d_eff % 256 == 0:
        tile_d = d_eff // 2
    else:
        tile_d = d_eff
    grid_d = d_eff // tile_d

    # Row tile sized purely by the VMEM byte budget (no artificial row cap),
    # quantized to the 32-row accumulator fold (also satisfies bf16 sublanes).
    ACC_ROWS = 32
    tile_rows = (per_buffer // max(tile_d * itemsize, 1)) // ACC_ROWS * ACC_ROWS
    tile_rows = max(ACC_ROWS, min(tile_rows, _round_up(n_rows, ACC_ROWS)))

    grid_n_total = pl.cdiv(n_rows, tile_rows)

    # Row split across TensorCores when the feature axis can't be split
    # (v7x narrow / folded D); each partition writes its own partial sum.
    n_parts = 2 if (num_tc >= 2 and grid_d == 1 and grid_n_total >= 4) else 1
    blocks_per_part = pl.cdiv(grid_n_total, n_parts)
    padded_blocks = n_parts * blocks_per_part != grid_n_total
    needs_mask = (n_rows % tile_rows != 0) or padded_blocks

    if padded_blocks:
        # Duplicated blocks of the last partition are clamped to a valid block
        # (their rows are fully masked in-kernel, so they contribute zero).
        def in_idx(p, j, i):
            return (jnp.minimum(p * blocks_per_part + i, grid_n_total - 1), j)
    else:
        def in_idx(p, j, i):
            return (p * blocks_per_part + i, j)

    kernel = _make_colsum_kernel(
        n_rows=n_rows,
        tile_rows=tile_rows,
        acc_rows=ACC_ROWS,
        blocks_per_part=blocks_per_part,
        needs_mask=needs_mask,
    )

    partials = pl.pallas_call(
        kernel,
        out_shape=jax.ShapeDtypeStruct((n_parts, 1, d_eff), jnp.float32),
        grid_spec=pltpu.PrefetchScalarGridSpec(
            num_scalar_prefetch=0,
            grid=(n_parts, grid_d, blocks_per_part),  # reduction axis last
            in_specs=[pl.BlockSpec((tile_rows, tile_d), in_idx)],
            out_specs=pl.BlockSpec((1, 1, tile_d), lambda p, j, i: (p, 0, j)),
            scratch_shapes=[pltpu.VMEM((ACC_ROWS, tile_d), jnp.float32)],
        ),
        compiler_params=pltpu.CompilerParams(
            dimension_semantics=("parallel", "parallel", "arbitrary"),
            vmem_limit_bytes=vmem_limit,
        ),
    )(v2d)

    sums = partials.sum(axis=(0, 1))  # (d_eff,) f32 column sums
    if fold > 1:
        sums = sums.reshape(fold, d).sum(axis=0)  # un-fold lane packing
    if tail is not None:
        sums = sums + tail.astype(jnp.float32).sum(axis=0)  # ragged fold tail
    x = (sums / jnp.float32(n_orig)).astype(value.dtype)
    return x, None


if __name__ == "__main__":
    key0 = jax.random.PRNGKey(0)
    kq, kk, kv = jax.random.split(key0, 3)

    # Small shapes consistent with the forward: (batch, seq, hidden)
    B, S, D = 2, 8, 32
    query = jax.random.normal(kq, (B, S, D), dtype=jnp.float32)
    key = jax.random.normal(kk, (B, S, D), dtype=jnp.float32)
    value = jax.random.normal(kv, (B, S, D), dtype=jnp.float32)

    x, attn = avg_attention(query, key, value)
    x = jax.block_until_ready(x)

    # Reference check (same semantics as torch.mean(value.view(-1, D), axis=0))
    ref = jnp.mean(value.reshape(-1, D), axis=0)
    assert x.shape == (D,)
    assert attn is None
    assert jnp.allclose(x, ref, atol=1e-5, rtol=1e-5)

    # Extra small-shape checks: ragged fold tail, lcm-based fold, unaligned D.
    for shape in [(3, 5, 32), (2, 5, 96), (4, 5, 200)]:
        v = jax.random.normal(jax.random.PRNGKey(1), shape, dtype=jnp.float32)
        got, _ = avg_attention(v, v, v)
        got = jax.block_until_ready(got)
        want = jnp.mean(v.reshape(-1, shape[-1]), axis=0)
        assert jnp.allclose(got, want, atol=1e-5, rtol=1e-5)

    print("KERNEL_OK")
</pallas_src>

<mosaic_0001>
module attributes {stable_mosaic.version = 11 : i64} {
  func.func @kernel(%arg0: i32, %arg1: i32, %arg2: i32, %arg3: memref<32x128xf32, #tpu.memory_space<vmem>>, %arg4: memref<1x1x128xf32, #tpu.memory_space<vmem>>, %arg5: memref<32x128xf32, #tpu.memory_space<vmem>>) attributes {dimension_semantics = [#tpu.dimension_semantics<parallel>, #tpu.dimension_semantics<parallel>, #tpu.dimension_semantics<arbitrary>], iteration_bounds = array<i64: 1, 1, 1>, scalar_prefetch = 0 : i64, scratch_operands = 1 : i64, tpu.core_type = #tpu.core_type<tc>, window_params = [{transform_indices = @transform_0, window_bounds = array<i64: 32, 128>}, {transform_indices = @transform_1, window_bounds = array<i64: 1, 1, 128>}]} {
    %c0_i32 = arith.constant 0 : i32
    %0 = arith.cmpi eq, %arg2, %c0_i32 : i32
    %1 = arith.extui %0 : i1 to i32
    %c0_i32_0 = arith.constant 0 : i32
    %2 = arith.cmpi ne, %1, %c0_i32_0 : i32
    scf.if %2 {
      %cst = arith.constant 0.000000e+00 : f32
      %16 = vector.broadcast %cst : f32 to vector<32x128xf32>
      %c0 = arith.constant 0 : index
      %c0_6 = arith.constant 0 : index
      %17 = vector.load %arg5[%c0, %c0_6] : memref<32x128xf32, #tpu.memory_space<vmem>>, vector<32x128xf32>
      tpu.vector_store %arg5[%c0, %c0_6], %16 {strides = array<i32>} : memref<32x128xf32, #tpu.memory_space<vmem>>, vector<32x128xf32>,
    } else {
    }
    %c1_i32 = arith.constant 1 : i32
    %3 = arith.muli %arg0, %c1_i32 : i32
    %4 = arith.addi %3, %arg2 : i32
    %c32_i32 = arith.constant 32 : i32
    %5 = arith.muli %4, %c32_i32 : i32
    %c32_i32_1 = arith.constant 32 : i32
    %6 = arith.addi %5, %c32_i32_1 : i32
    %c4_i32 = arith.constant 4 : i32
    %7 = arith.cmpi sle, %6, %c4_i32 : i32
    %8 = arith.extui %7 : i1 to i32
    %c0_i32_2 = arith.constant 0 : i32
    %9 = arith.cmpi ne, %8, %c0_i32_2 : i32
    scf.if %9 {
      %c0 = arith.constant 0 : index
      %c0_6 = arith.constant 0 : index
      %16 = vector.load %arg3[%c0, %c0_6] : memref<32x128xf32, #tpu.memory_space<vmem>>, vector<32x128xf32>
      %17 = vector.shape_cast %16 : vector<32x128xf32> to vector<1x32x128xf32>
      %c0_7 = arith.constant 0 : index
      %c0_8 = arith.constant 0 : index
      %18 = vector.load %arg5[%c0_7, %c0_8] : memref<32x128xf32, #tpu.memory_space<vmem>>, vector<32x128xf32>
      %cst = arith.constant dense<0.000000e+00> : vector<32x128xf32>
      %19 = vector.multi_reduction <add>, %17, %cst [0] : vector<1x32x128xf32> to vector<32x128xf32>
      %20 = arith.addf %18, %19 : vector<32x128xf32>
      %c0_9 = arith.constant 0 : index
      %c0_10 = arith.constant 0 : index
      %21 = vector.load %arg5[%c0_9, %c0_10] : memref<32x128xf32, #tpu.memory_space<vmem>>, vector<32x128xf32>
      tpu.vector_store %arg5[%c0_9, %c0_10], %20 {strides = array<i32>} : memref<32x128xf32, #tpu.memory_space<vmem>>, vector<32x128xf32>,
    } else {
    }
    %true = arith.constant true
    %10 = arith.xori %7, %true : i1
    %11 = arith.extui %10 : i1 to i32
    %c0_i32_3 = arith.constant 0 : i32
    %12 = arith.cmpi ne, %11, %c0_i32_3 : i32
    scf.if %12 {
      %c0 = arith.constant 0 : index
      %c0_6 = arith.constant 0 : index
      %16 = vector.load %arg3[%c0, %c0_6] : memref<32x128xf32, #tpu.memory_space<vmem>>, vector<32x128xf32>
      %17 = tpu.iota {dimensions = array<i32: 0>} : vector<32x128xi32>
      %18 = vector.broadcast %5 : i32 to vector<32x128xi32>
      %19 = arith.addi %18, %17 : vector<32x128xi32>
      %c4_i32_7 = arith.constant 4 : i32
      %20 = vector.broadcast %c4_i32_7 : i32 to vector<32x128xi32>
      %21 = arith.cmpi slt, %19, %20 : vector<32x128xi32>
      %cst = arith.constant 0.000000e+00 : f32
      %22 = vector.broadcast %cst : f32 to vector<32x128xf32>
      %23 = arith.select %21, %16, %22 : vector<32x128xi1>, vector<32x128xf32>
      %24 = vector.shape_cast %23 : vector<32x128xf32> to vector<1x32x128xf32>
      %c0_8 = arith.constant 0 : index
      %c0_9 = arith.constant 0 : index
      %25 = vector.load %arg5[%c0_8, %c0_9] : memref<32x128xf32, #tpu.memory_space<vmem>>, vector<32x128xf32>
      %cst_10 = arith.constant dense<0.000000e+00> : vector<32x128xf32>
      %26 = vector.multi_reduction <add>, %24, %cst_10 [0] : vector<1x32x128xf32> to vector<32x128xf32>
      %27 = arith.addf %25, %26 : vector<32x128xf32>
      %c0_11 = arith.constant 0 : index
      %c0_12 = arith.constant 0 : index
      %28 = vector.load %arg5[%c0_11, %c0_12] : memref<32x128xf32, #tpu.memory_space<vmem>>, vector<32x128xf32>
      tpu.vector_store %arg5[%c0_11, %c0_12], %27 {strides = array<i32>} : memref<32x128xf32, #tpu.memory_space<vmem>>, vector<32x128xf32>,
    } else {
    }
    %c0_i32_4 = arith.constant 0 : i32
    %13 = arith.cmpi eq, %arg2, %c0_i32_4 : i32
    %14 = arith.extui %13 : i1 to i32
    %c0_i32_5 = arith.constant 0 : i32
    %15 = arith.cmpi ne, %14, %c0_i32_5 : i32
    scf.if %15 {
      %c0 = arith.constant 0 : index
      %c0_6 = arith.constant 0 : index
      %16 = vector.load %arg5[%c0, %c0_6] : memref<32x128xf32, #tpu.memory_space<vmem>>, vector<32x128xf32>
      %cst = arith.constant dense<0.000000e+00> : vector<128xf32>
      %17 = vector.multi_reduction <add>, %16, %cst [0] : vector<32x128xf32> to vector<128xf32>
      %18 = vector.shape_cast %17 : vector<128xf32> to vector<1x128xf32>
      %19 = vector.shape_cast %18 : vector<1x128xf32> to vector<1x1x128xf32>
      %c0_7 = arith.constant 0 : index
      %c0_8 = arith.constant 0 : index
      %c0_9 = arith.constant 0 : index
      %20 = vector.load %arg4[%c0_7, %c0_8, %c0_9] : memref<1x1x128xf32, #tpu.memory_space<vmem>>, vector<1x1x128xf32>
      tpu.vector_store %arg4[%c0_7, %c0_8, %c0_9], %19 {strides = array<i32>} : memref<1x1x128xf32, #tpu.memory_space<vmem>>, vector<1x1x128xf32>,
    } else {
    }
    return
  }
  func.func @transform_0(%arg0: i32, %arg1: i32, %arg2: i32) -> (i32, i32) {
    %c1_i32 = arith.constant 1 : i32
    %0 = arith.muli %arg0, %c1_i32 : i32
    %1 = arith.addi %0, %arg2 : i32
    %c0_i32 = arith.constant 0 : i32
    return %1, %arg1 : i32, i32
  }
  func.func @transform_1(%arg0: i32, %arg1: i32, %arg2: i32) -> (i32, i32, i32) {
    %c0_i32 = arith.constant 0 : i32
    %c0_i32_0 = arith.constant 0 : i32
    return %arg0, %c0_i32, %arg1 : i32, i32, i32
  }
}

</mosaic_0001>

<bundles_post_ra>
// kernel: tpu_custom_call.1
= control target key start
LH: loop header
LB: loop body
LE: loop exit
PB: predicated region body
PF: predicated region fallthrough
CT: control target
= control target key end

     0   :  { %6 = vsyncpa [#allocation4], 0  ;;  %s213_s0 = inlined_call_operand.hbm [shape: f32[4,128], index: 0, kind: input, shape index: {}]   ;;  %s214_s1 = inlined_call_operand.hbm [shape: f32[1,1,128], index: 1, kind: output, shape index: {}]  }
   0x1   :  { %7 = vsyncpa [#allocation5], 0 }
   0x2   :  { %16 = vsyncadd [#allocation4], 448  ;;  %s193_s6 = smov [#allocation3]  }
   0x3   :  { %s21_s7 = sshll.u32 %s193_s6, 4  ;;  %s22_s7 = int_to_ptr.vmem [resolvable:$true] %s21_s7 }
   0x4   :  { %s157_s8 = scalar_lea.vmem %s22_s7, 64  ;;  %s161_s9 = scalar_lea.vmem %s22_s7, 512 }
   0x5   :  { %p158_p0 = scmp.ne.s32.totalorder %s22_s7, %s157_s8  ;;  %p162_p1 = scmp.lt.s32.totalorder %s22_s7, %s22_s7 }
   0x6   :  { %p163_p2 = scmp.lt.s32.totalorder %s161_s9, %s157_s8 }
   0x8   :  { %p164_p3 = por %p163_p2, %p162_p1 }
   0xa   :  { %p165_p4 = pnand %p164_p3, %p158_p0 }
   0xc   :  { %168 = shalt.err (!%p165_p4)
}
   0xd   :  { %s194_s10 = smov 64   ;;  %s195_s11 = smov 4  }
   0xe   :  { %27 = dma.hbm_to_vmem [thread:$0]  %s213_s0, 64, %s22_s7, [#allocation4], %s194_s10, %s194_s10, %s195_s11  }
   0xf   :  { %189 = dma.done.wait [#allocation4], 512  }
  0x10   :  { %190 = vsyncadd [#allocation4], 4294966784  ;;  %v144_v0 = vld [vmem:[#allocation3] sm:$0xf]  ;;  %s196_s14 = smov [#allocation6]  }
  0x11   :  { %v122_v1 = vrot.slane %v144_v0, 4  ;;  %s135_s15 = sshll.u32 %s196_s14, 4  ;;  %s136_s15 = int_to_ptr.vmem [resolvable:$true] %s135_s15 }
  0x12   :  { %s169_s16 = scalar_lea.vmem %s136_s15, 16  ;;  %s173_s17 = scalar_lea.vmem %s136_s15, 32 }
  0x13   :  { %v123_v2 = vadd.f32 %v144_v0, %v122_v1  ;;  %p170_p5 = scmp.ne.s32.totalorder %s136_s15, %s169_s16  ;;  %p174_p6 = scmp.lt.s32.totalorder %s136_s15, %s136_s15 }
  0x14   :  { %p175_p7 = scmp.lt.s32.totalorder %s173_s17, %s169_s16 }
  0x15   :  { %v124_v3 = vrot.slane %v123_v2, 2 }
  0x16   :  { %p176_p8 = por %p175_p7, %p174_p6 }
  0x17   :  { %v125_v4 = vadd.f32 %v124_v3, %v123_v2 }
  0x18   :  { %p177_p9 = pnand %p176_p8, %p170_p5 }
  0x19   :  { %v126_v5 = vrot.slane %v125_v4, 1 }
  0x1b   :  { %v127_v6 = vadd.f32 %v126_v5, %v125_v4 }
  0x1d   :  { %128 = vst [vmem:[#allocation6] sm:$0x1] %v127_v6 }
  0x1e   :  { %180 = shalt.err (!%p177_p9)
}
  0x1f   :  { %138 = dma.vmem_to_hbm [thread:$0]  %s136_s15, 16, %s214_s1, [#allocation5]  }
  0x20   :  { %191 = dma.done.wait [#allocation5], 16  }
  0x21   :  { %192 = vsyncadd [#allocation5], 4294967280 }
  0x22   :  { %142 = vsyncpa [#allocation4], 1 }
  0x23   :  { %143 = vsyncpa [#allocation5], 1 }

</bundles_post_ra>
